<compile_context>
chip_gen: v5e
topology: v5e:2x2
jax: 0.10.0
libtpu: 0.0.40
codegen_flags: <defaults>
</compile_context>

<pallas_src>
import jax
import jax.numpy as jnp
from jax.experimental import pallas as pl
from jax.experimental.pallas import tpu as pltpu

LANE = 128          # TPU lane width
SUBLANE_BF16 = 16   # bf16 packs 16 rows per (sublane, lane) vreg tile


def _round_up(n, m):
    return ((n + m - 1) // m) * m


# ----------------------------------------------------------------------------- kernel
def dqn_kernel(x_ref, w_ref, b_ref, o_ref):
    # x_ref: (TM, S)          f32  (raw batch tile; cast to bf16 in-kernel)
    # w_ref: (Sp + 256, 128)  bf16 (packed [W1p; W2p; W3p], VMEM-resident)
    # b_ref: (3, 128)         f32  (packed [b1; b2; b3], VMEM-resident)
    # o_ref: (TM, 128)        bf16 (lane-dense padded Q-values)
    s = x_ref.shape[1]
    lane = o_ref.shape[1]
    sp = w_ref.shape[0] - 2 * lane   # padded row count of the W1 section

    x = x_ref[...].astype(jnp.bfloat16)      # f32 -> bf16 fused in-kernel
    w1 = w_ref[0:s, :]                       # rows [s:sp) are zero-pad anyway
    w2 = w_ref[sp:sp + lane, :]
    w3 = w_ref[sp + lane:sp + 2 * lane, :]

    # Layers 1/2: Linear -> bias -> ReLU.  Keep only the bf16 copy of the
    # intermediate live so large tiles never round-trip VMEM as f32.
    h1 = jnp.maximum(
        jnp.dot(x, w1, preferred_element_type=jnp.float32) + b_ref[0:1, :],
        0.0).astype(jnp.bfloat16)
    h2 = jnp.maximum(
        jnp.dot(h1, w2, preferred_element_type=jnp.float32) + b_ref[1:2, :],
        0.0).astype(jnp.bfloat16)

    # Layer 3: Linear (Q-values, no activation)
    q = jnp.dot(h2, w3, preferred_element_type=jnp.float32) + b_ref[2:3, :]
    o_ref[...] = q.astype(o_ref.dtype)


# ----------------------------------------------------------------------------- packing
def pack_dqn_params(params):
    """Pack the 6 tiny param arrays into 2 lane-dense buffers (done once)."""
    w1, b1, w2, b2, w3, b3 = (params["w1"], params["b1"], params["w2"],
                              params["b2"], params["w3"], params["b3"])
    S, H = w1.shape
    A = w3.shape[1]
    assert H <= LANE and A <= LANE, "hidden/action sizes above 128 lanes not supported"
    Sp = _round_up(S, SUBLANE_BF16)   # keeps the W2/W3 sections sublane-aligned

    w1p = jnp.zeros((Sp, LANE), jnp.float32).at[:S, :H].set(w1)
    w2p = jnp.zeros((LANE, LANE), jnp.float32).at[:H, :H].set(w2)
    w3p = jnp.zeros((LANE, LANE), jnp.float32).at[:H, :A].set(w3)
    w_packed = jnp.concatenate([w1p, w2p, w3p], axis=0).astype(jnp.bfloat16)

    b_packed = (jnp.zeros((3, LANE), jnp.float32)
                .at[0, :H].set(b1)
                .at[1, :H].set(b2)
                .at[2, :A].set(b3))

    return {"w": w_packed, "b": b_packed, "state_size": S, "action_size": A}


# ----------------------------------------------------------------------------- wrapper
def dqn_forward(x, packed, *, tm_cap=2048, out_dtype=jnp.bfloat16):
    """DQN forward.  x: (B, state_size) f32.  Returns the padded, lane-dense
    (B, 128) Q buffer; Q-values occupy lanes [:action_size] (remaining lanes
    are exact zeros).  Consumers should read those lanes directly rather than
    forcing a separate full-buffer slice pass."""
    B, S = x.shape
    assert S == packed["state_size"]
    w_packed, b_packed = packed["w"], packed["b"]
    R = w_packed.shape[0]

    # Tile selection: per-grid-step overhead (~0.35 us) dominates at DQN sizes,
    # so keep the step count tiny.
    #   * small batch  -> one full-extent block (grid = 1)
    #   * medium batch -> exactly 2 steps so "parallel" shards across the two
    #     v7x TensorCores (near-free extra step on single-TC v5e/v6e)
    #   * huge batch   -> cap TM; per-tile VMEM stays tiny either way.
    if B <= 256:
        TM = B
    elif B <= 2 * tm_cap:
        TM = _round_up(pl.cdiv(B, 2), SUBLANE_BF16)
    else:
        TM = tm_cap
    grid = pl.cdiv(B, TM)
    # Final block may be partial: its writeback is masked by Pallas and the
    # garbage rows it computes on are never observed.

    return pl.pallas_call(
        dqn_kernel,
        out_shape=jax.ShapeDtypeStruct((B, LANE), out_dtype),
        grid=(grid,),
        in_specs=[
            # x streamed per batch tile, straight from HBM (no wrapper pad/copy).
            pl.BlockSpec((TM, S), lambda i: (i, 0)),
            # Params: constant index map + single buffer -> one DMA, resident.
            pl.BlockSpec((R, LANE), lambda i: (0, 0),
                         pipeline_mode=pl.Buffered(1)),
            pl.BlockSpec((3, LANE), lambda i: (0, 0),
                         pipeline_mode=pl.Buffered(1)),
        ],
        out_specs=pl.BlockSpec((TM, LANE), lambda i: (i, 0)),
        compiler_params=pltpu.CompilerParams(
            dimension_semantics=("parallel",)),
    )(x, w_packed, b_packed)


def dqn_q_values(x, packed):
    """Convenience: forward + slice to (B, action_size) f32.
    NOTE: the slice is an extra HBM pass; prefer consuming dqn_forward's
    padded buffer directly (or fuse this into the consumer's jit)."""
    q = dqn_forward(x, packed)
    return q[:, :packed["action_size"]].astype(jnp.float32)


# ----------------------------------------------------------------------------- init / refs
def init_dqn_params(key, state_size, action_size, hidden=18):
    """Deterministic init mimicking PyTorch nn.Linear default (U[-1/sqrt(fan_in), +])."""
    keys = jax.random.split(key, 6)

    def linear(kw, kb, fan_in, fan_out):
        bound = 1.0 / jnp.sqrt(jnp.float32(fan_in))
        # Stored already transposed: (in_features, out_features)
        w = jax.random.uniform(kw, (fan_in, fan_out), jnp.float32, -bound, bound)
        b = jax.random.uniform(kb, (fan_out,), jnp.float32, -bound, bound)
        return w, b

    w1, b1 = linear(keys[0], keys[1], state_size, hidden)
    w2, b2 = linear(keys[2], keys[3], hidden, hidden)
    w3, b3 = linear(keys[4], keys[5], hidden, action_size)
    return {"w1": w1, "b1": b1, "w2": w2, "b2": b2, "w3": w3, "b3": b3}


def dqn_reference_f32(x, p):
    """Pure-f32 reference (original PyTorch semantics)."""
    h1 = jnp.maximum(x @ p["w1"] + p["b1"], 0.0)
    h2 = jnp.maximum(h1 @ p["w2"] + p["b2"], 0.0)
    return h2 @ p["w3"] + p["b3"]


def dqn_reference_bf16(x, p):
    """Reference replicating the kernel's matmul numerics (bf16 operands,
    f32 accumulate).  The kernel additionally rounds the stored output to bf16."""
    bf = jnp.bfloat16
    h1 = jnp.maximum(
        jnp.dot(x.astype(bf), p["w1"].astype(bf),
                preferred_element_type=jnp.float32) + p["b1"], 0.0)
    h2 = jnp.maximum(
        jnp.dot(h1.astype(bf), p["w2"].astype(bf),
                preferred_element_type=jnp.float32) + p["b2"], 0.0)
    return jnp.dot(h2.astype(bf), p["w3"].astype(bf),
                   preferred_element_type=jnp.float32) + p["b3"]


if __name__ == "__main__":
    key = jax.random.PRNGKey(0)
    k_x, k_p, k_x2 = jax.random.split(key, 3)

    state_size = 16
    action_size = 4
    params = init_dqn_params(k_p, state_size, action_size)
    packed = pack_dqn_params(params)   # done once, reused across calls

    # --- Small "acting" batch: grid = 1, full-extent block, no wrapper pad.
    batch = 2
    x = jax.random.normal(k_x, (batch, state_size), jnp.float32)
    q_pad = jax.block_until_ready(dqn_forward(x, packed))
    assert q_pad.shape == (batch, LANE)
    q = jnp.asarray(q_pad[:, :action_size], jnp.float32)
    # Tolerances account for bf16 operand rounding + bf16 output store.
    assert jnp.allclose(q, dqn_reference_bf16(x, params), atol=1e-2, rtol=1e-2), \
        "mismatch vs bf16-matched reference"
    assert jnp.allclose(q, dqn_reference_f32(x, params), atol=5e-2, rtol=0.0), \
        "mismatch vs f32 reference"

    # --- Medium "replay" batch: grid = 2 (engages both v7x TCs), partial last block.
    batch2 = 300
    x2 = jax.random.normal(k_x2, (batch2, state_size), jnp.float32)
    q2 = jax.block_until_ready(dqn_q_values(x2, packed))
    assert q2.shape == (batch2, action_size)
    assert jnp.allclose(q2, dqn_reference_bf16(x2, params), atol=1e-2, rtol=1e-2), \
        "mismatch vs bf16-matched reference (replay batch)"
    assert jnp.allclose(q2, dqn_reference_f32(x2, params), atol=5e-2, rtol=0.0), \
        "mismatch vs f32 reference (replay batch)"

    print("KERNEL_OK")
</pallas_src>

<mosaic_0001>
module attributes {stable_mosaic.version = 11 : i64} {
  func.func @dqn_kernel(%arg0: i32, %arg1: memref<2x16xf32, #tpu.memory_space<vmem>>, %arg2: memref<272x128xbf16, #tpu.memory_space<vmem>>, %arg3: memref<3x128xf32, #tpu.memory_space<vmem>>, %arg4: memref<2x128xbf16, #tpu.memory_space<vmem>>) attributes {dimension_semantics = [#tpu.dimension_semantics<parallel>], iteration_bounds = array<i64: 1>, scalar_prefetch = 0 : i64, scratch_operands = 0 : i64, tpu.core_type = #tpu.core_type<tc>, window_params = [{transform_indices = @transform_0, window_bounds = array<i64: 2, 16>}, {pipeline_mode = #tpu.pipeline_mode<synchronous>, transform_indices = @transform_1, window_bounds = array<i64: 272, 128>}, {pipeline_mode = #tpu.pipeline_mode<synchronous>, transform_indices = @transform_2, window_bounds = array<i64: 3, 128>}, {transform_indices = @transform_3, window_bounds = array<i64: 2, 128>}]} {
    %c0 = arith.constant 0 : index
    %c0_0 = arith.constant 0 : index
    %0 = vector.load %arg1[%c0, %c0_0] : memref<2x16xf32, #tpu.memory_space<vmem>>, vector<2x16xf32>
    %1 = arith.truncf %0 : vector<2x16xf32> to vector<2x16xbf16>
    %c0_1 = arith.constant 0 : index
    %c0_2 = arith.constant 0 : index
    %2 = vector.load %arg2[%c0_1, %c0_2] : memref<272x128xbf16, #tpu.memory_space<vmem>>, vector<16x128xbf16>
    %c16 = arith.constant 16 : index
    %c0_3 = arith.constant 0 : index
    %3 = vector.load %arg2[%c16, %c0_3] : memref<272x128xbf16, #tpu.memory_space<vmem>>, vector<128x128xbf16>
    %c144 = arith.constant 144 : index
    %c0_4 = arith.constant 0 : index
    %4 = vector.load %arg2[%c144, %c0_4] : memref<272x128xbf16, #tpu.memory_space<vmem>>, vector<128x128xbf16>
    %cst = arith.constant dense<0.000000e+00> : vector<2x128xf32>
    %5 = tpu.matmul %1, %2, %cst {dimension_numbers = #tpu.dot_dimension_numbers<[1], [0], [0], [1], [0, 0, 1, 1], [], []>} : vector<2x16xbf16>, vector<16x128xbf16>, vector<2x128xf32> -> vector<2x128xf32>
    %c0_5 = arith.constant 0 : index
    %c0_6 = arith.constant 0 : index
    %6 = vector.load %arg3[%c0_5, %c0_6] : memref<3x128xf32, #tpu.memory_space<vmem>>, vector<1x128xf32>
    %7 = vector.broadcast %6 : vector<1x128xf32> to vector<2x128xf32>
    %8 = arith.addf %5, %7 : vector<2x128xf32>
    %cst_7 = arith.constant 0.000000e+00 : f32
    %9 = vector.broadcast %cst_7 : f32 to vector<2x128xf32>
    %10 = arith.maximumf %8, %9 : vector<2x128xf32>
    %11 = arith.truncf %10 : vector<2x128xf32> to vector<2x128xbf16>
    %cst_8 = arith.constant dense<0.000000e+00> : vector<2x128xf32>
    %12 = tpu.matmul %11, %3, %cst_8 {dimension_numbers = #tpu.dot_dimension_numbers<[1], [0], [0], [1], [0, 0, 1, 1], [], []>} : vector<2x128xbf16>, vector<128x128xbf16>, vector<2x128xf32> -> vector<2x128xf32>
    %c1 = arith.constant 1 : index
    %c0_9 = arith.constant 0 : index
    %13 = vector.load %arg3[%c1, %c0_9] : memref<3x128xf32, #tpu.memory_space<vmem>>, vector<1x128xf32>
    %14 = vector.broadcast %13 : vector<1x128xf32> to vector<2x128xf32>
    %15 = arith.addf %12, %14 : vector<2x128xf32>
    %cst_10 = arith.constant 0.000000e+00 : f32
    %16 = vector.broadcast %cst_10 : f32 to vector<2x128xf32>
    %17 = arith.maximumf %15, %16 : vector<2x128xf32>
    %18 = arith.truncf %17 : vector<2x128xf32> to vector<2x128xbf16>
    %cst_11 = arith.constant dense<0.000000e+00> : vector<2x128xf32>
    %19 = tpu.matmul %18, %4, %cst_11 {dimension_numbers = #tpu.dot_dimension_numbers<[1], [0], [0], [1], [0, 0, 1, 1], [], []>} : vector<2x128xbf16>, vector<128x128xbf16>, vector<2x128xf32> -> vector<2x128xf32>
    %c2 = arith.constant 2 : index
    %c0_12 = arith.constant 0 : index
    %20 = vector.load %arg3[%c2, %c0_12] : memref<3x128xf32, #tpu.memory_space<vmem>>, vector<1x128xf32>
    %21 = vector.broadcast %20 : vector<1x128xf32> to vector<2x128xf32>
    %22 = arith.addf %19, %21 : vector<2x128xf32>
    %23 = arith.truncf %22 : vector<2x128xf32> to vector<2x128xbf16>
    %c0_13 = arith.constant 0 : index
    %c0_14 = arith.constant 0 : index
    %24 = vector.load %arg4[%c0_13, %c0_14] : memref<2x128xbf16, #tpu.memory_space<vmem>>, vector<2x128xbf16>
    tpu.vector_store %arg4[%c0_13, %c0_14], %23 {strides = array<i32>} : memref<2x128xbf16, #tpu.memory_space<vmem>>, vector<2x128xbf16>,
    return
  }
  func.func @transform_0(%arg0: i32) -> (i32, i32) {
    %c0_i32 = arith.constant 0 : i32
    %c0_i32_0 = arith.constant 0 : i32
    return %arg0, %c0_i32 : i32, i32
  }
  func.func @transform_1(%arg0: i32) -> (i32, i32) {
    %c0_i32 = arith.constant 0 : i32
    %c0_i32_0 = arith.constant 0 : i32
    %c0_i32_1 = arith.constant 0 : i32
    return %c0_i32, %c0_i32_0 : i32, i32
  }
  func.func @transform_2(%arg0: i32) -> (i32, i32) {
    %c0_i32 = arith.constant 0 : i32
    %c0_i32_0 = arith.constant 0 : i32
    %c0_i32_1 = arith.constant 0 : i32
    return %c0_i32, %c0_i32_0 : i32, i32
  }
  func.func @transform_3(%arg0: i32) -> (i32, i32) {
    %c0_i32 = arith.constant 0 : i32
    %c0_i32_0 = arith.constant 0 : i32
    return %arg0, %c0_i32 : i32, i32
  }
}

</mosaic_0001>

<bundles_post_ra>
// kernel: tpu_custom_call.1
= control target key start
LH: loop header
LB: loop body
LE: loop exit
PB: predicated region body
PF: predicated region fallthrough
CT: control target
= control target key end

     0   :  { %8 = vsyncpa [#allocation3], 0  ;;  %s505_s0 = inlined_call_operand.hbm [shape: f32[2,16], index: 0, kind: input, shape index: {}]   ;;  %s506_s1 = inlined_call_operand.hbm [shape: bf16[272,128], index: 1, kind: input, shape index: {}]   ;;  %s507_s2 = inlined_call_operand.hbm [shape: f32[3,128], index: 2, kind: input, shape index: {}]   ;;  %s508_s3 = inlined_call_operand.hbm [shape: bf16[2,128], index: 3, kind: output, shape index: {}]  }
   0x1   :  { %9 = vsyncpa [#allocation6], 0  ;;  %s26_s14 = sshll.u32 %s506_s1, 4  ;;  %s27_s14 = int_to_ptr.hbm [resolvable:$true] %s26_s14 }
   0x2   :  { %10 = vsyncpa [#allocation4], 0  ;;  %s467_s15 = smov [#allocation5]   ;;  %s16_s19 = sshll.u32 %s505_s0, 4  ;;  %s17_s19 = int_to_ptr.hbm [resolvable:$true] %s16_s19 }
   0x3   :  { %s28_s16 = sshll.u32 %s467_s15, 4  ;;  %s468_s20 = smov 64   ;;  %s29_s16 = int_to_ptr.vmem [resolvable:$true] %s28_s16 }
   0x4   :  { %s469_s21 = smov 4   ;;  %s470_s22 = smov [#allocation2]  }
   0x5   :  { %34 = dma.hbm_to_vmem [thread:$0]  %s27_s14, 2176, %s29_s16, [#allocation6], %s468_s20, %s468_s20, %s469_s21  }
   0x6   :  { %s18_s23 = sshll.u32 %s470_s22, 4  ;;  %s40_s26 = sshll.u32 %s507_s2, 4  ;;  %s19_s23 = int_to_ptr.vmem [resolvable:$true] %s18_s23  ;;  %s41_s26 = int_to_ptr.hbm [resolvable:$true] %s40_s26 }
   0x7   :  { %21 = dma.hbm_to_vmem [thread:$0]  %s17_s19, 32, %s19_s23, [#allocation3]  }
   0x8   :  { %s471_s1 = smov [#allocation7]  }
   0x9   :  { %s42_s27 = sshll.u32 %s471_s1, 4  ;;  %s43_s27 = int_to_ptr.vmem [resolvable:$true] %s42_s27 }
   0xa   :  { %45 = dma.hbm_to_vmem [thread:$0]  %s41_s26, 64, %s43_s27, [#allocation6]  }
   0xb   :  { %461 = dma.done.wait [#allocation3], 32  }
   0xc   :  { %462 = vsyncadd [#allocation3], 4294967264 }
   0xd   :  { %463 = dma.done.wait [#allocation6], 2240  }
   0xe   :  { %464 = vsyncadd [#allocation6], 4294965056  ;;  %v339_v0 = vld [vmem:[#allocation5] sm:$0xff]  ;;  %v59_v1 = vld [vmem:[#allocation2] sm:$0x3]  ;;  %vm103_vm0 = vcmask 130048  }
   0xf   :  { %v347_v2 = vld [vmem:[#allocation5 + $0x40] sm:$0xff]  ;;  %v60_v3 = vpack.c.bf16 %v59_v1, %v59_v1  ;;  %114 = vmatpush.bf16.msra.mxu0 %v339_v0  ;;  %v346_v4 = vld [vmem:[#allocation5 + $0x38] sm:$0xff]  ;;  %v345_v5 = vld [vmem:[#allocation5 + $0x30] sm:$0xff]  ;;  %s472_s0 = smov [#allocation8]   ;;  %s259_s30 = sshll.u32 %s508_s3, 4  ;;  %s260_s30 = int_to_ptr.hbm [resolvable:$true] %s259_s30 }
  0x10   :  { %172 = vmatpush.bf16.msra.mxu1 %v347_v2  ;;  %v344_v6 = vld [vmem:[#allocation5 + $0x28] sm:$0xff]  ;;  %v343_v7 = vld [vmem:[#allocation5 + $0x20] sm:$0xff]  ;;  %v342_v8 = vld [vmem:[#allocation5 + $0x18] sm:$0xff]  ;;  %s257_s2 = sshll.u32 %s472_s0, 4  ;;  %s258_s2 = int_to_ptr.vmem [resolvable:$true] %s257_s2 }
  0x11   :  { %v341_v9 = vld [vmem:[#allocation5 + $0x10] sm:$0xff]  ;;  %v340_v10 = vld [vmem:[#allocation5 + $0x8] sm:$0xff]  ;;  %v355_v11 = vld [vmem:[#allocation5 + $0x80] sm:$0xff] }
  0x12   :  { %274 = vmatmul.msk.bf16.vlgmr.msra.gmra.mxu0 %vm103_vm0, %v60_v3  ;;  %237 = vmatpush.bf16.msra.mxu2 %v355_v11  ;;  %v354_v12 = vld [vmem:[#allocation5 + $0x78] sm:$0xff]  ;;  %v353_v13 = vld [vmem:[#allocation5 + $0x70] sm:$0xff]  ;;  %v352_v14 = vld [vmem:[#allocation5 + $0x68] sm:$0xff] }
  0x13   :  { %v351_v15 = vld [vmem:[#allocation5 + $0x60] sm:$0xff]  ;;  %v350_v16 = vld [vmem:[#allocation5 + $0x58] sm:$0xff]  ;;  %v362_v17 = vld [vmem:[#allocation7] ss:$0 sm:$0xff] }
  0x14   :  { %173 = vmatpush.bf16.msra.mxu1 %v346_v4  ;;  %v349_v23 = vld [vmem:[#allocation5 + $0x50] sm:$0xff]  ;;  %v348_v24 = vld [vmem:[#allocation5 + $0x48] sm:$0xff] }
  0x15   :  { %v363_v25 = vld [vmem:[#allocation7 + $0x1] ss:$0 sm:$0xff]  ;;  %v364_v31 = vld [vmem:[#allocation7 + $0x2] ss:$0 sm:$0xff] }
  0x16   :  { %238 = vmatpush.bf16.msra.mxu2 %v354_v12 }
  0x18   :  { %174 = vmatpush.bf16.msra.mxu1 %v345_v5 }
  0x1a   :  { %239 = vmatpush.bf16.msra.mxu2 %v353_v13 }
  0x1c   :  { %175 = vmatpush.bf16.msra.mxu1 %v344_v6 }
  0x1e   :  { %240 = vmatpush.bf16.msra.mxu2 %v352_v14 }
  0x20   :  { %176 = vmatpush.bf16.msra.mxu1 %v343_v7 }
  0x22   :  { %241 = vmatpush.bf16.msra.mxu2 %v351_v15 }
  0x24   :  { %177 = vmatpush.bf16.msra.mxu1 %v342_v8 }
  0x26   :  { %242 = vmatpush.bf16.msra.mxu2 %v350_v16 }
  0x28   :  { %178 = vmatpush.bf16.msra.mxu1 %v341_v9 }
  0x2a   :  { %243 = vmatpush.bf16.msra.mxu2 %v349_v23 }
  0x2c   :  { %179 = vmatpush.bf16.msra.mxu1 %v340_v10 }
  0x2e   :  { %244 = vmatpush.bf16.msra.mxu2 %v348_v24 }
  0x8f   :  { %v116_v18 = vpop.f32.mrf.mxu0 }
  0x90   :  { %v117_v19 = vadd.f32 %v362_v17, %v116_v18 }
  0x92   :  { %v120_v20 = vmax.f32 %v117_v19, 0.0 }
  0x94   :  { %v121_v21 = vpack.c.bf16 %v120_v20, %v120_v20 }
  0x96   :  { %180 = vmatmul.bf16.vlgmr.msra.gmra.mxu1 %v121_v21 }
  0x97   :  { %v118_v22 = vpop.f32.mrf.mxu0 }
 0x113   :  { %v181_v26 = vpop.f32.mrf.mxu1 }
 0x114   :  { %v182_v27 = vadd.f32 %v363_v25, %v181_v26 }
 0x116   :  { %v185_v28 = vmax.f32 %v182_v27, 0.0 }
 0x118   :  { %v186_v29 = vpack.c.bf16 %v185_v28, %v185_v28 }
 0x11a   :  { %245 = vmatmul.bf16.vlgmr.msra.gmra.mxu2 %v186_v29 }
 0x11b   :  { %v183_v30 = vpop.f32.mrf.mxu1 }
 0x19d   :  { %v246_v32 = vpop.f32.mrf.mxu2 }
 0x19e   :  { %v247_v33 = vadd.f32 %v364_v31, %v246_v32 }
 0x1a0   :  { %v250_v34 = vpack.c.bf16 %v247_v33, %v247_v33 }
 0x1a2   :  { %251 = vst [vmem:[#allocation8] sm:$0x1] %v250_v34 }
 0x1a3   :  { %262 = dma.vmem_to_hbm [thread:$0]  %s258_s2, 16, %s260_s30, [#allocation4]  }
 0x1a5   :  { %v248_v35 = vpop.f32.mrf.mxu2 }
 0x1a6   :  { %465 = dma.done.wait [#allocation4], 16  }
 0x1a7   :  { %466 = vsyncadd [#allocation4], 4294967280 }
 0x1a8   :  { %267 = vsyncpa [#allocation3], 1 }
 0x1a9   :  { %268 = vsyncpa [#allocation6], 1 }
 0x1aa   :  { %269 = vsyncpa [#allocation4], 1 }

</bundles_post_ra>
